<compile_context>
chip_gen: v7x
topology: tpu7x:2x2x1
jax: 0.10.0
libtpu: 0.0.40
codegen_flags: <defaults>
</compile_context>

<pallas_src>
import functools
import math

import numpy as np

import jax
import jax.numpy as jnp
from jax import lax
from jax.experimental import pallas as pl
from jax.experimental.pallas import tpu as pltpu

GAMMA = 2.0        # exponent is exactly 2 -> implemented as d*d (no lax.pow)
ALPHA = 0.75
EPS = 1e-14
LANES = 128

CLASS_WEIGHTS = (2.8184, 244.5, 61.125, 326.0, 0.5161,
                 81.5, 108.6667, 54.3333, 69.8571, 88.9091)
NUM_CLASSES = len(CLASS_WEIGHTS)

# 64 original rows of 10 classes pack into one 640-lane row (640 = lcm(10, 128)).
PACK = LANES // math.gcd(NUM_CLASSES, LANES)      # 64
PACKED_COLS = PACK * NUM_CLASSES                  # 640


def _focal_loss_elems(x, t, a_pos, a_neg):
    """Element-wise *signed* focal term  a * (1-p)^2 * log(p + eps)  (<= 0).

    The true loss is the negation; the sign flip is applied after the block
    reduction so it is not a per-element op.  Each element is exclusively
    'positive' (t == 1) or 'negative', so the two reference branches are fused:
    one log + one multiply-square per element (GAMMA == 2).
    `a_pos` / `a_neg` are (1, cols) rows already scaled by alpha / (1 - alpha).
    """
    x = x.astype(jnp.float32)
    is_pos = t.astype(jnp.float32) == 1.0
    p = jnp.where(is_pos, x, 1.0 - x)          # probability of the active branch
    a = jnp.where(is_pos, a_pos, a_neg)        # alpha-scaled class weight
    d = 1.0 - p
    return a * (d * d) * jnp.log(p + EPS)


# ---------------------------------------------------------------------------
# Small / tail path: whole problem in one gridless call (lane-sparse (B, 10)
# layout, but it reads exactly B*10 elements per input - optimal at this size).
# ---------------------------------------------------------------------------
def _bce_focal_small_kernel(x_ref, t_ref, o_ref, *, scale):
    num_cols = x_ref.shape[1]
    # Class-weight row built in-register from scalar literals (no weight DMA).
    col = lax.broadcasted_iota(jnp.int32, (1, num_cols), 1)
    w = jnp.zeros((1, num_cols), jnp.float32)
    for j, wj in enumerate(CLASS_WEIGHTS):
        w = jnp.where(col == j, jnp.float32(wj), w)
    elems = _focal_loss_elems(x_ref[...], t_ref[...],
                              w * jnp.float32(ALPHA), w * jnp.float32(1.0 - ALPHA))
    # elems is signed (<= 0); multiply by -scale to get scale * true_loss_sum.
    o_ref[...] = jnp.sum(elems, keepdims=True) * jnp.float32(-scale)


def _bce_focal_small(inputs, target, *, scale):
    out = pl.pallas_call(
        functools.partial(_bce_focal_small_kernel, scale=float(scale)),
        out_shape=jax.ShapeDtypeStruct((1, 1), jnp.float32),
        in_specs=[pl.BlockSpec(memory_space=pltpu.MemorySpace.VMEM),
                  pl.BlockSpec(memory_space=pltpu.MemorySpace.VMEM)],
        out_specs=pl.BlockSpec(memory_space=pltpu.MemorySpace.VMEM),
    )(inputs, target)
    return out[0, 0]


# ---------------------------------------------------------------------------
# Tiled path: lane-dense (R, 640) layout, parallel grid, per-block partials.
# ---------------------------------------------------------------------------
def _bce_focal_tiled_kernel(x_ref, t_ref, w_ref, o_ref, *, rows_in_last):
    # Pre-scaled weight rows, resident in VMEM across all grid steps.
    a_pos = w_ref[0:1, :]
    a_neg = w_ref[1:2, :]

    def emit(valid_rows):
        loss = _focal_loss_elems(x_ref[...], t_ref[...], a_pos, a_neg)
        if valid_rows is not None:
            # Partial last block: rows >= valid_rows hold unspecified data and
            # MUST be masked (the select also kills any NaN/Inf from garbage x).
            row = lax.broadcasted_iota(jnp.int32, loss.shape, 0)
            loss = jnp.where(row < valid_rows, loss, 0.0)
        rows, cols = loss.shape
        # Fold sublane-groups with pure VPU adds -> (8, cols) partial; the
        # cross-lane/cross-sublane reduction happens once, in the wrapper.
        psum = jnp.sum(loss.reshape(rows // 8, 8, cols), axis=0)
        o_ref[...] = (-psum)[None]            # negate reduced partial -> true loss

    if rows_in_last is None:                  # static: every block is full
        emit(None)
    else:
        last = pl.num_programs(0) - 1

        @pl.when(pl.program_id(0) != last)
        def _full():
            emit(None)

        @pl.when(pl.program_id(0) == last)
        def _partial():
            emit(rows_in_last)


def _bce_focal_tiled(inputs, target, *, tile_b):
    batch, num_cls = inputs.shape
    n_cols = PACK * num_cls                   # 640
    r = batch // PACK                         # packed rows
    b_main = r * PACK

    # Sublane granule for the packed-row tiling (8 f32 / 16 bf16 / 32 int8).
    itemsize = min(inputs.dtype.itemsize, target.dtype.itemsize, 4)
    granule = 8 * (4 // max(1, itemsize))
    tile_r = (min(tile_b, r) // granule) * granule
    if tile_r <= 0:
        return _bce_focal_small(inputs, target, scale=1.0 / batch)

    num_blocks = pl.cdiv(r, tile_r)
    rem = r % tile_r
    rows_in_last = rem if rem else None

    # Free reshape (contiguous row-major) into the lane-dense layout; only when
    # B is not a multiple of 64 does the prefix slice cost a copy, and the
    # <64-row tail goes through the tiny gridless kernel.
    x_main = inputs if b_main == batch else inputs[:b_main]
    t_main = target if b_main == batch else target[:b_main]
    x2 = x_main.reshape(r, n_cols)
    t2 = t_main.reshape(r, n_cols)

    # (2, 640) alpha-scaled weight rows: 5 KiB constant, resident in VMEM.
    w_row = np.tile(np.asarray(CLASS_WEIGHTS, np.float32), PACK)
    w2 = jnp.asarray(np.stack([w_row * ALPHA, w_row * (1.0 - ALPHA)])
                     .astype(np.float32))

    partials = pl.pallas_call(
        functools.partial(_bce_focal_tiled_kernel, rows_in_last=rows_in_last),
        out_shape=jax.ShapeDtypeStruct((num_blocks, 8, n_cols), jnp.float32),
        grid=(num_blocks,),
        in_specs=[pl.BlockSpec((tile_r, n_cols), lambda i: (i, 0)),
                  pl.BlockSpec((tile_r, n_cols), lambda i: (i, 0)),
                  pl.BlockSpec((2, n_cols), lambda i: (0, 0))],
        out_specs=pl.BlockSpec((1, 8, n_cols), lambda i: (i, 0, 0)),
        compiler_params=pltpu.CompilerParams(
            # Independent per-block partials -> safe to shard across both
            # TensorCores on v7x; harmless on single-TC v5e/v6e.
            dimension_semantics=("parallel",)),
    )(x2, t2, w2)

    total = jnp.sum(partials)
    if b_main != batch:
        total = total + _bce_focal_small(inputs[b_main:], target[b_main:], scale=1.0)
    return total / batch


def bce_focal_loss(inputs, target, *, tile_b=1024, small_batch_rows=2048):
    """Forward pass of BceFocalLoss (reduction='mean')."""
    batch, num_cls = inputs.shape
    if num_cls != NUM_CLASSES:
        raise ValueError(f"expected {NUM_CLASSES} classes, got {num_cls}")
    if batch <= small_batch_rows or batch < PACK * 32:
        return _bce_focal_small(inputs, target, scale=1.0 / batch)
    return _bce_focal_tiled(inputs, target, tile_b=tile_b)


# ---------------------------------------------------------------------------
# Plain-JAX reference (same math as the PyTorch forward).
# ---------------------------------------------------------------------------
def _reference(inputs, target):
    w = jnp.array([CLASS_WEIGHTS], dtype=jnp.float32)
    pos_id = (target == 1.0).astype(jnp.float32)
    neg_id = 1.0 - pos_id
    pos_loss = -w * pos_id * (1.0 - inputs) ** GAMMA * ALPHA * jnp.log(inputs + EPS)
    neg_loss = -w * neg_id * inputs ** GAMMA * (1 - ALPHA) * jnp.log(1.0 - inputs + EPS)
    return jnp.mean(jnp.sum(pos_loss + neg_loss, axis=1))


if __name__ == "__main__":
    key = jax.random.PRNGKey(0)
    k1, k2, k3, k4 = jax.random.split(key, 4)

    # Small case matching the module: batch=8, classes=10 (weight is (1, 10)).
    batch, num_cls = 8, NUM_CLASSES
    inputs = jax.nn.sigmoid(jax.random.normal(k1, (batch, num_cls), dtype=jnp.float32))
    target = (jax.random.uniform(k2, (batch, num_cls)) > 0.5).astype(jnp.float32)

    loss = bce_focal_loss(inputs, target)
    jax.block_until_ready(loss)
    ref = _reference(inputs, target)
    assert jnp.allclose(loss, ref, rtol=1e-5, atol=1e-4), (loss, ref)

    # Larger batch exercises the lane-dense tiled path: 4113 = 64*64 + 17 ->
    # 64 packed rows of 640 lanes plus a 17-row tail through the small kernel.
    batch2 = 4113
    inputs2 = jax.nn.sigmoid(jax.random.normal(k3, (batch2, num_cls), dtype=jnp.float32))
    target2 = (jax.random.uniform(k4, (batch2, num_cls)) > 0.5).astype(jnp.float32)
    ref2 = _reference(inputs2, target2)

    loss2 = bce_focal_loss(inputs2, target2)            # default tile: 1 full block
    jax.block_until_ready(loss2)
    assert jnp.allclose(loss2, ref2, rtol=1e-4, atol=1e-3), (loss2, ref2)

    loss3 = bce_focal_loss(inputs2, target2, tile_b=24)  # 3 blocks, masked last block
    jax.block_until_ready(loss3)
    assert jnp.allclose(loss3, ref2, rtol=1e-4, atol=1e-3), (loss3, ref2)

    print("KERNEL_OK")
</pallas_src>

<mosaic_0001>
module attributes {stable_mosaic.version = 11 : i64} {
  func.func @_bce_focal_small_kernel(%arg0: memref<8x10xf32, #tpu.memory_space<vmem>>, %arg1: memref<8x10xf32, #tpu.memory_space<vmem>>, %arg2: memref<1x1xf32, #tpu.memory_space<vmem>>) attributes {dimension_semantics = [], scalar_prefetch = 0 : i64, scratch_operands = 0 : i64, tpu.core_type = #tpu.core_type<tc>} {
    %0 = tpu.iota {dimensions = array<i32: 1>} : vector<1x10xi32>
    %cst = arith.constant 0.000000e+00 : f32
    %1 = vector.broadcast %cst : f32 to vector<1x10xf32>
    %c0_i32 = arith.constant 0 : i32
    %2 = vector.broadcast %c0_i32 : i32 to vector<1x10xi32>
    %3 = arith.cmpi eq, %0, %2 : vector<1x10xi32>
    %cst_0 = arith.constant 2.818400e+00 : f32
    %4 = vector.broadcast %cst_0 : f32 to vector<1x10xf32>
    %5 = arith.select %3, %4, %1 : vector<1x10xi1>, vector<1x10xf32>
    %c1_i32 = arith.constant 1 : i32
    %6 = vector.broadcast %c1_i32 : i32 to vector<1x10xi32>
    %7 = arith.cmpi eq, %0, %6 : vector<1x10xi32>
    %cst_1 = arith.constant 2.445000e+02 : f32
    %8 = vector.broadcast %cst_1 : f32 to vector<1x10xf32>
    %9 = arith.select %7, %8, %5 : vector<1x10xi1>, vector<1x10xf32>
    %c2_i32 = arith.constant 2 : i32
    %10 = vector.broadcast %c2_i32 : i32 to vector<1x10xi32>
    %11 = arith.cmpi eq, %0, %10 : vector<1x10xi32>
    %cst_2 = arith.constant 6.112500e+01 : f32
    %12 = vector.broadcast %cst_2 : f32 to vector<1x10xf32>
    %13 = arith.select %11, %12, %9 : vector<1x10xi1>, vector<1x10xf32>
    %c3_i32 = arith.constant 3 : i32
    %14 = vector.broadcast %c3_i32 : i32 to vector<1x10xi32>
    %15 = arith.cmpi eq, %0, %14 : vector<1x10xi32>
    %cst_3 = arith.constant 3.260000e+02 : f32
    %16 = vector.broadcast %cst_3 : f32 to vector<1x10xf32>
    %17 = arith.select %15, %16, %13 : vector<1x10xi1>, vector<1x10xf32>
    %c4_i32 = arith.constant 4 : i32
    %18 = vector.broadcast %c4_i32 : i32 to vector<1x10xi32>
    %19 = arith.cmpi eq, %0, %18 : vector<1x10xi32>
    %cst_4 = arith.constant 5.161000e-01 : f32
    %20 = vector.broadcast %cst_4 : f32 to vector<1x10xf32>
    %21 = arith.select %19, %20, %17 : vector<1x10xi1>, vector<1x10xf32>
    %c5_i32 = arith.constant 5 : i32
    %22 = vector.broadcast %c5_i32 : i32 to vector<1x10xi32>
    %23 = arith.cmpi eq, %0, %22 : vector<1x10xi32>
    %cst_5 = arith.constant 8.150000e+01 : f32
    %24 = vector.broadcast %cst_5 : f32 to vector<1x10xf32>
    %25 = arith.select %23, %24, %21 : vector<1x10xi1>, vector<1x10xf32>
    %c6_i32 = arith.constant 6 : i32
    %26 = vector.broadcast %c6_i32 : i32 to vector<1x10xi32>
    %27 = arith.cmpi eq, %0, %26 : vector<1x10xi32>
    %cst_6 = arith.constant 108.666702 : f32
    %28 = vector.broadcast %cst_6 : f32 to vector<1x10xf32>
    %29 = arith.select %27, %28, %25 : vector<1x10xi1>, vector<1x10xf32>
    %c7_i32 = arith.constant 7 : i32
    %30 = vector.broadcast %c7_i32 : i32 to vector<1x10xi32>
    %31 = arith.cmpi eq, %0, %30 : vector<1x10xi32>
    %cst_7 = arith.constant 5.433330e+01 : f32
    %32 = vector.broadcast %cst_7 : f32 to vector<1x10xf32>
    %33 = arith.select %31, %32, %29 : vector<1x10xi1>, vector<1x10xf32>
    %c8_i32 = arith.constant 8 : i32
    %34 = vector.broadcast %c8_i32 : i32 to vector<1x10xi32>
    %35 = arith.cmpi eq, %0, %34 : vector<1x10xi32>
    %cst_8 = arith.constant 6.985710e+01 : f32
    %36 = vector.broadcast %cst_8 : f32 to vector<1x10xf32>
    %37 = arith.select %35, %36, %33 : vector<1x10xi1>, vector<1x10xf32>
    %c9_i32 = arith.constant 9 : i32
    %38 = vector.broadcast %c9_i32 : i32 to vector<1x10xi32>
    %39 = arith.cmpi eq, %0, %38 : vector<1x10xi32>
    %cst_9 = arith.constant 8.890910e+01 : f32
    %40 = vector.broadcast %cst_9 : f32 to vector<1x10xf32>
    %41 = arith.select %39, %40, %37 : vector<1x10xi1>, vector<1x10xf32>
    %c0 = arith.constant 0 : index
    %c0_10 = arith.constant 0 : index
    %42 = vector.load %arg0[%c0, %c0_10] : memref<8x10xf32, #tpu.memory_space<vmem>>, vector<8x10xf32>
    %c0_11 = arith.constant 0 : index
    %c0_12 = arith.constant 0 : index
    %43 = vector.load %arg1[%c0_11, %c0_12] : memref<8x10xf32, #tpu.memory_space<vmem>>, vector<8x10xf32>
    %cst_13 = arith.constant 7.500000e-01 : f32
    %44 = vector.broadcast %cst_13 : f32 to vector<1x10xf32>
    %45 = arith.mulf %41, %44 : vector<1x10xf32>
    %cst_14 = arith.constant 2.500000e-01 : f32
    %46 = vector.broadcast %cst_14 : f32 to vector<1x10xf32>
    %47 = arith.mulf %41, %46 : vector<1x10xf32>
    %cst_15 = arith.constant 1.000000e+00 : f32
    %48 = vector.broadcast %cst_15 : f32 to vector<8x10xf32>
    %49 = arith.cmpf oeq, %43, %48 : vector<8x10xf32>
    %cst_16 = arith.constant 1.000000e+00 : f32
    %50 = vector.broadcast %cst_16 : f32 to vector<8x10xf32>
    %51 = arith.subf %50, %42 : vector<8x10xf32>
    %52 = arith.select %49, %42, %51 : vector<8x10xi1>, vector<8x10xf32>
    %53 = vector.shape_cast %45 : vector<1x10xf32> to vector<1x10xf32>
    %54 = vector.broadcast %53 : vector<1x10xf32> to vector<8x10xf32>
    %55 = vector.shape_cast %47 : vector<1x10xf32> to vector<1x10xf32>
    %56 = vector.broadcast %55 : vector<1x10xf32> to vector<8x10xf32>
    %57 = arith.select %49, %54, %56 : vector<8x10xi1>, vector<8x10xf32>
    %cst_17 = arith.constant 1.000000e+00 : f32
    %58 = vector.broadcast %cst_17 : f32 to vector<8x10xf32>
    %59 = arith.subf %58, %52 : vector<8x10xf32>
    %60 = arith.mulf %59, %59 : vector<8x10xf32>
    %61 = arith.mulf %57, %60 : vector<8x10xf32>
    %cst_18 = arith.constant 9.99999982E-15 : f32
    %62 = vector.broadcast %cst_18 : f32 to vector<8x10xf32>
    %63 = arith.addf %52, %62 : vector<8x10xf32>
    %64 = math.log %63 : vector<8x10xf32>
    %65 = arith.mulf %61, %64 : vector<8x10xf32>
    %66 = vector.shape_cast %65 : vector<8x10xf32> to vector<1x8x10xf32>
    %cst_19 = arith.constant dense<0.000000e+00> : vector<1xf32>
    %67 = vector.multi_reduction <add>, %66, %cst_19 [1, 2] : vector<1x8x10xf32> to vector<1xf32>
    %68 = vector.shape_cast %67 : vector<1xf32> to vector<1x1x1xf32>
    %69 = vector.extract %68[0, 0, 0] : f32 from vector<1x1x1xf32>
    %70 = vector.broadcast %69 : f32 to vector<1x1xf32>
    %cst_20 = arith.constant -1.250000e-01 : f32
    %71 = vector.broadcast %cst_20 : f32 to vector<1x1xf32>
    %72 = arith.mulf %70, %71 : vector<1x1xf32>
    %c0_21 = arith.constant 0 : index
    %c0_22 = arith.constant 0 : index
    %73 = vector.load %arg2[%c0_21, %c0_22] : memref<1x1xf32, #tpu.memory_space<vmem>>, vector<1x1xf32>
    tpu.vector_store %arg2[%c0_21, %c0_22], %72 {strides = array<i32>} : memref<1x1xf32, #tpu.memory_space<vmem>>, vector<1x1xf32>,
    return
  }
}

</mosaic_0001>

<bundles_post_ra>
// kernel: tpu_custom_call.1
= control target key start
LH: loop header
LB: loop body
LE: loop exit
PB: predicated region body
PF: predicated region fallthrough
CT: control target
= control target key end

     0   :  { %7 = vsyncpa [#allocation3], 0  ;;  %s241_s0 = inlined_call_operand.hbm [shape: f32[8,10], index: 0, kind: input, shape index: {}]   ;;  %s242_s1 = inlined_call_operand.hbm [shape: f32[8,10], index: 1, kind: input, shape index: {}]   ;;  %s243_s2 = inlined_call_operand.hbm [shape: f32[1,1], index: 2, kind: output, shape index: {}]  }
   0x1   :  { %8 = vsyncpa [#allocation6], 0 }
   0x2   :  { %9 = vsyncpa [#allocation4], 0  ;;  %s184_s9 = smov [#allocation2]   ;;  %s185_s11 = smov [#allocation5]  }
   0x3   :  { %s16_s10 = sshll.u32 %s184_s9, 4  ;;  %s26_s12 = sshll.u32 %s185_s11, 4  ;;  %s17_s10 = int_to_ptr.vmem [resolvable:$true] %s16_s10  ;;  %s27_s12 = int_to_ptr.vmem [resolvable:$true] %s26_s12 }
   0x4   :  { %s112_s15 = scalar_lea.hbm %s241_s0, 128 }
   0x5   :  { %p113_p0 = scmp.ne.s32.totalorder %s241_s0, %s112_s15  ;;  %p116_p1 = scmp.lt.u32.totalorder %s112_s15, %s241_s0 }
   0x7   :  { %p118_p2 = pnand %p116_p1, %p113_p0 }
   0x9   :  { %121 = shalt.err (!%p118_p2)
}
   0xa   :  { %s122_s20 = scalar_lea.vmem %s17_s10, 128  ;;  %p127_p4 = scmp.lt.s32.totalorder %s17_s10, %s17_s10 }
   0xb   :  { %p123_p3 = scmp.ne.s32.totalorder %s17_s10, %s122_s20  ;;  %p128_p5 = scmp.lt.s32.totalorder %s122_s20, %s122_s20 }
   0xd   :  { %p129_p6 = por %p128_p5, %p127_p4 }
   0xf   :  { %p130_p7 = pnand %p129_p6, %p123_p3 }
  0x11   :  { %133 = shalt.err (!%p130_p7)
}
  0x12   :  { %19 = dma.hbm_to_vmem [thread:$0]  %s241_s0, 128, %s17_s10, [#allocation3]  }
  0x13   :  { %s134_s25 = scalar_lea.hbm %s242_s1, 128 }
  0x14   :  { %p135_p8 = scmp.ne.s32.totalorder %s242_s1, %s134_s25  ;;  %p138_p9 = scmp.lt.u32.totalorder %s134_s25, %s242_s1 }
  0x16   :  { %p140_p10 = pnand %p138_p9, %p135_p8 }
  0x18   :  { %143 = shalt.err (!%p140_p10)
}
  0x19   :  { %s144_s30 = scalar_lea.vmem %s27_s12, 128  ;;  %p149_p12 = scmp.lt.s32.totalorder %s27_s12, %s27_s12 }
  0x1a   :  { %p145_p11 = scmp.ne.s32.totalorder %s27_s12, %s144_s30  ;;  %p150_p13 = scmp.lt.s32.totalorder %s144_s30, %s144_s30 }
  0x1c   :  { %p151_p0 = por %p150_p13, %p149_p12 }
  0x1e   :  { %p152_p1 = pnand %p151_p0, %p145_p11 }
  0x20   :  { %155 = shalt.err (!%p152_p1)
}
  0x21   :  { %29 = dma.hbm_to_vmem [thread:$0]  %s242_s1, 128, %s27_s12, [#allocation6]  }
  0x22   :  { %178 = dma.done.wait [#allocation3], 128  }
  0x23   :  { %179 = vsyncadd [#allocation3], 4294967168 }
  0x24   :  { %180 = dma.done.wait [#allocation6], 128  }
  0x25   :  { %181 = vsyncadd [#allocation6], 4294967168  ;;  %v36_v0 = vlaneseq  ;;  %v186_v2 = vmov 0.0   ;;  %v58_v6 = vld [vmem:[#allocation2] sm:$0xff]  ;;  %v59_v7 = vld [vmem:[#allocation5] sm:$0xff]  ;;  %vm73_vm11 = vcmask 80896  }
  0x26   :  { %vm62_vm7 = vcmp.eq.f32.partialorder %v59_v7, 1.0  ;;  %v63_v9 = vsub.f32 1.0, %v58_v6  ;;  %s187_s1 = smov [#allocation7]   ;;  %vm86_vm12 = vcmask 0  }
  0x27   :  { %v37_v1 = vand.u32 127, %v36_v0  ;;  %s94_s4 = sshll.u32 %s187_s1, 4  ;;  %s95_s4 = int_to_ptr.vmem [resolvable:$true] %s94_s4 }
  0x28   :  { %v64_v12 = vsel %vm62_vm7, %v58_v6, %v63_v9  ;;  %s156_s6 = scalar_lea.vmem %s95_s4, 16  ;;  %s160_s7 = scalar_lea.vmem %s95_s4, 32 }
  0x29   :  { %vm38_vm0 = vcmp.eq.s32.totalorder %v37_v1, 0  ;;  %vm40_vm1 = vcmp.eq.s32.totalorder %v37_v1, 1  ;;  %vm42_vm2 = vcmp.eq.s32.totalorder %v37_v1, 2  ;;  %vm44_vm3 = vcmp.eq.s32.totalorder %v37_v1, 3  ;;  %p157_p2 = scmp.ne.s32.totalorder %s95_s4, %s156_s6  ;;  %p161_p3 = scmp.lt.s32.totalorder %s95_s4, %s95_s4 }
  0x2a   :  { %v39_v3 = vsel %vm38_vm0, 2.8184, %v186_v2  ;;  %vm46_vm4 = vcmp.eq.s32.totalorder %v37_v1, 4  ;;  %vm48_vm5 = vcmp.eq.s32.totalorder %v37_v1, 5  ;;  %vm50_vm6 = vcmp.eq.s32.totalorder %v37_v1, 6  ;;  %p162_p4 = scmp.lt.s32.totalorder %s160_s7, %s156_s6 }
  0x2b   :  { %v41_v4 = vsel %vm40_vm1, 244.5, %v39_v3  ;;  %vm52_vm8 = vcmp.eq.s32.totalorder %v37_v1, 7  ;;  %vm54_vm9 = vcmp.eq.s32.totalorder %v37_v1, 8  ;;  %vm56_vm10 = vcmp.eq.s32.totalorder %v37_v1, 9 }
  0x2c   :  { %v43_v5 = vsel %vm42_vm2, 61.125, %v41_v4  ;;  %v69_v14 = vadd.f32 1e-14, %v64_v12  ;;  %v66_v18 = vsub.f32 1.0, %v64_v12  ;;  %p163_p5 = por %p162_p4, %p161_p3 }
  0x2d   :  { %v45_v8 = vsel %vm44_vm3, 326.0, %v43_v5 }
  0x2e   :  { %v47_v10 = vsel %vm46_vm4, 0.5161, %v45_v8  ;;  %110 = vlog2.f32 %v69_v14  ;;  %v67_v21 = vmul.f32 %v66_v18, %v66_v18  ;;  %p164_p6 = pnand %p163_p5, %p157_p2 }
  0x2f   :  { %v49_v11 = vsel %vm48_vm5, 81.5, %v47_v10 }
  0x30   :  { %v51_v13 = vsel %vm50_vm6, 108.6667, %v49_v11 }
  0x31   :  { %v53_v15 = vsel %vm52_vm8, 54.3333, %v51_v13 }
  0x32   :  { %v55_v16 = vsel %vm54_vm9, 69.8571, %v53_v15 }
  0x33   :  { %v57_v17 = vsel %vm56_vm10, 88.9091, %v55_v16 }
  0x34   :  { %v60_v19 = vmul.f32 0.75, %v57_v17  ;;  %v61_v20 = vmul.f32 0.25, %v57_v17 }
  0x36   :  { %v65_v22 = vsel %vm62_vm7, %v60_v19, %v61_v20 }
  0x37   :  { %v68_v23 = vmul.f32 %v67_v21, %v65_v22 }
  0x38   :  { %v111_v24 = vpop.eup %110 }
  0x39   :  { %v71_v25 = vmul.f32 0.6931472, %v111_v24 }
  0x3b   :  { %v72_v26 = vmul.f32 %v71_v25, %v68_v23 }
  0x3d   :  { %v74_v27 = vsel %vm73_vm11, %v72_v26, 0.0 }
  0x3e   :  { %75 = vadd.xlane.f32.xlu0 %v74_v27 }
  0xcb   :  { %v76_v28 = vpop.xlane.xlu0 %75 }
  0xcc   :  { %v77_v29 = vrot.slane %v76_v28, 4 }
  0xce   :  { %v78_v30 = vadd.f32 %v77_v29, %v76_v28 }
  0xd0   :  { %v79_v31 = vrot.slane %v78_v30, 2 }
  0xd2   :  { %v80_v32 = vadd.f32 %v79_v31, %v78_v30 }
  0xd4   :  { %v81_v33 = vrot.slane %v80_v32, 1 }
  0xd6   :  { %v82_v34 = vadd.f32 %v81_v33, %v80_v32 }
  0xd8   :  { %104 = vpush %v82_v34 }
 0x109   :  { %s105_s5 = spop %104 }
 0x10a   :  { %v84_v35 = vstv %s105_s5 }
 0x10b   :  { %v85_v36 = vmul.f32 -0.125, %v84_v35 }
 0x10d   :  { %87 = vst.msk [vmem:[#allocation7] sm:$0x1] %vm86_vm12, %v85_v36 }
 0x10e   :  { %167 = shalt.err (!%p164_p6)
}
 0x10f   :  { %s168_s10 = scalar_lea.hbm %s243_s2, 16 }
 0x110   :  { %p169_p7 = scmp.ne.s32.totalorder %s243_s2, %s168_s10  ;;  %p172_p8 = scmp.lt.u32.totalorder %s168_s10, %s243_s2 }
 0x112   :  { %p174_p9 = pnand %p172_p8, %p169_p7 }
 0x114   :  { %177 = shalt.err (!%p174_p9)
}
 0x115   :  { %97 = dma.vmem_to_hbm [thread:$0]  %s95_s4, 16, %s243_s2, [#allocation4]  }
 0x116   :  { %182 = dma.done.wait [#allocation4], 16  }
 0x117   :  { %183 = vsyncadd [#allocation4], 4294967280 }
 0x118   :  { %101 = vsyncpa [#allocation3], 1 }
 0x119   :  { %102 = vsyncpa [#allocation6], 1 }
 0x11a   :  { %103 = vsyncpa [#allocation4], 1 }

</bundles_post_ra>
